<compile_context>
chip_gen: v7x
topology: tpu7x:2x2x1
jax: 0.10.0
libtpu: 0.0.40
codegen_flags: <defaults>
</compile_context>

<pallas_src>
import functools
import math

import jax
import jax.numpy as jnp
from jax import lax
from jax.experimental import pallas as pl
from jax.experimental.pallas import tpu as pltpu

ALPHA = 0.5
BETA = 0.5
NUM_CLASSES = 10

_LOG_1E4 = math.log(1.0e4)  # == -log(1e-4): RCE weight of every non-target class


def _round_up(v, m):
    return (v + m - 1) // m * m


def _sce_kernel(x_ref, tgt_ref, out_ref, acc_ref, *,
                alpha, beta, n_valid, tile_n, tiles_per_split):
    i = pl.program_id(0)      # "parallel" split axis (both TCs on v7x)
    j = pl.program_id(1)      # "arbitrary" reduction axis over sample tiles

    @pl.when(j == 0)
    def _init():
        acc_ref[...] = jnp.zeros_like(acc_ref)

    x = x_ref[...].astype(jnp.float32)          # (C, TILE_N), lane-dense samples
    tgt = tgt_ref[...]                          # (1, TILE_N) int32
    c, tn = x.shape

    cls_ids = lax.broadcasted_iota(jnp.int32, (c, tn), 0)
    one_hot = cls_ids == tgt                    # (C, TILE_N) bool (sublane bcast)

    # ---- CE: logsumexp(x) - x[target], all per-sample data lives on lanes ----
    col_max = jnp.max(x, axis=0, keepdims=True)                     # (1, TILE_N)
    ex = jnp.exp(x - col_max)                                       # (C, TILE_N)
    sum_ex = jnp.sum(ex, axis=0, keepdims=True)                     # (1, TILE_N)
    x_tgt = jnp.sum(jnp.where(one_hot, x, 0.0), axis=0, keepdims=True)
    log_sum = jnp.log(sum_ex)
    ce = log_sum + col_max - x_tgt                                  # (1, TILE_N)

    # ---- RCE collapsed:
    #   -sum_j clip(p_j)*log(clip(onehot_j)) = log(1e4) * sum_{j!=t} clip(p_j)
    #                                       ~= log(1e4) * (1 - p_t)
    #   with p_t = exp(x_t - max - log(sum_ex)) = exp(-ce).
    p_t = jnp.exp(-ce)                                              # (1, TILE_N)
    rce = jnp.float32(_LOG_1E4) * (1.0 - jnp.clip(p_t, 1e-7, 1.0))

    # ---- mask padded samples, accumulate alpha*ce + beta*rce ----------------
    col_start = (i * tiles_per_split + j) * tile_n
    col_ids = col_start + lax.broadcasted_iota(jnp.int32, (1, tn), 1)
    per_col = jnp.float32(alpha) * ce + jnp.float32(beta) * rce
    acc_ref[...] += jnp.where(col_ids < n_valid, per_col, 0.0)

    @pl.when(j == pl.num_programs(1) - 1)
    def _finish():
        # Each split writes its partial mean (already divided by the true N);
        # the wrapper just sums the num_splits partials.
        partial = jnp.sum(acc_ref[...], axis=1, keepdims=True)        # (1, 1)
        out_ref[...] = (partial * jnp.float32(1.0 / n_valid))[None]   # (1, 1, 1)


def _sce_loss_ref(x, target, *, alpha=ALPHA, beta=BETA, num_classes=NUM_CLASSES):
    # Plain-JAX reference (also used as the small-batch dispatch path).
    x = x.astype(jnp.float32)
    lse = jax.scipy.special.logsumexp(x, axis=-1)
    x_t = jnp.take_along_axis(x, target[:, None].astype(jnp.int32), axis=-1)[:, 0]
    ce = jnp.mean(lse - x_t)
    prob = jnp.clip(jax.nn.softmax(x, axis=-1), 1e-07, 1.0)
    oh = jnp.clip(jax.nn.one_hot(target, num_classes, dtype=jnp.float32), 1e-4, 1.0)
    rce = jnp.mean(-jnp.sum(prob * jnp.log(oh), axis=-1))
    return alpha * ce + beta * rce


def sce_loss(x, target, *, alpha=ALPHA, beta=BETA, num_classes=NUM_CLASSES,
             tile_n=4096, use_pallas=None):
    assert x.ndim == 2 and x.shape[-1] == num_classes
    n, c = x.shape

    if use_pallas is None:
        use_pallas = n >= 1024   # tiny problems: per-call overhead dominates
    if not use_pallas:
        return _sce_loss_ref(x, target, alpha=alpha, beta=beta,
                             num_classes=num_classes)

    # bf16/f32 logits go straight to the kernel (upcast happens on-chip);
    # anything else is normalised to f32.
    if x.dtype not in (jnp.bfloat16, jnp.float32):
        x = x.astype(jnp.float32)

    # Samples live on the lane axis -> tile must be a multiple of 128.
    tile_n = min(tile_n, _round_up(n, 128))
    tile_n = max(128, _round_up(tile_n, 128))
    num_tiles = pl.cdiv(n, tile_n)
    # Prefer >= 4 tiles (2 per TensorCore split) so each core keeps prefetch /
    # writeback overlap; shrink tile_n rather than collapsing to one split.
    while num_tiles < 4 and tile_n >= 1024:
        tile_n //= 2
        num_tiles = pl.cdiv(n, tile_n)
    num_splits = 2 if num_tiles >= 4 else 1      # feed both TensorCores on v7x
    tiles_per_split = pl.cdiv(num_tiles, num_splits)
    n_pad = num_splits * tiles_per_split * tile_n

    # Lane-dense layout: classes on sublanes (10/16 dense), samples on lanes.
    xt = jnp.transpose(jnp.pad(x, ((0, n_pad - n), (0, 0))))          # (C, n_pad)
    tgt = jnp.pad(target.astype(jnp.int32), ((0, n_pad - n),)).reshape(1, n_pad)

    kernel = functools.partial(
        _sce_kernel, alpha=float(alpha), beta=float(beta), n_valid=n,
        tile_n=tile_n, tiles_per_split=tiles_per_split)

    blk_idx = lambda i, j: (0, i * tiles_per_split + j)

    # Sublane-padded HBM/VMEM footprints: logits pad 10 -> 16 rows, targets
    # (1, n_pad) pad to 8 rows.
    bytes_accessed = (16 * n_pad * x.dtype.itemsize
                      + 8 * n_pad * 4
                      + num_splits * 4)

    partials = pl.pallas_call(
        kernel,
        out_shape=jax.ShapeDtypeStruct((num_splits, 1, 1), jnp.float32),
        grid_spec=pltpu.PrefetchScalarGridSpec(
            num_scalar_prefetch=0,
            grid=(num_splits, tiles_per_split),
            in_specs=[
                pl.BlockSpec((c, tile_n), blk_idx),
                pl.BlockSpec((1, tile_n), blk_idx),
            ],
            out_specs=pl.BlockSpec((1, 1, 1), lambda i, j: (i, 0, 0)),
            scratch_shapes=[pltpu.VMEM((1, tile_n), jnp.float32)],
        ),
        compiler_params=pltpu.CompilerParams(
            dimension_semantics=("parallel", "arbitrary"),
            vmem_limit_bytes=32 * 1024 * 1024,
        ),
        cost_estimate=pl.CostEstimate(
            flops=10 * n_pad * c,
            transcendentals=n_pad * (c + 2),
            bytes_accessed=bytes_accessed,
        ),
    )(xt, tgt)
    return jnp.sum(partials)


if __name__ == "__main__":
    k0, k1, k2, k3 = jax.random.split(jax.random.PRNGKey(0), 4)

    # Small shapes implied by the module: logits (batch, num_classes=10).
    batch = 8
    x = jax.random.normal(k0, (batch, NUM_CLASSES), dtype=jnp.float32)
    target = jax.random.randint(k1, (batch,), 0, NUM_CLASSES, dtype=jnp.int32)

    loss = jax.block_until_ready(sce_loss(x, target, use_pallas=True))
    ref = jax.block_until_ready(_sce_loss_ref(x, target))
    assert jnp.allclose(loss, ref, rtol=1e-4, atol=1e-4), (loss, ref)

    # Tiled path: non-multiple-of-tile batch with a small tile exercises the
    # grid/accumulator, the 2-split "parallel" axis and the padded-sample mask.
    n2 = 1000
    x2 = 3.0 * jax.random.normal(k2, (n2, NUM_CLASSES), dtype=jnp.float32)
    t2 = jax.random.randint(k3, (n2,), 0, NUM_CLASSES, dtype=jnp.int32)
    loss2 = jax.block_until_ready(sce_loss(x2, t2, tile_n=128, use_pallas=True))
    ref2 = jax.block_until_ready(_sce_loss_ref(x2, t2))
    assert jnp.allclose(loss2, ref2, rtol=1e-4, atol=1e-4), (loss2, ref2)

    print("KERNEL_OK")
</pallas_src>

<mosaic_0001>
module attributes {stable_mosaic.version = 11 : i64} {
  func.func @_sce_kernel(%arg0: i32, %arg1: i32, %arg2: memref<10x128xf32, #tpu.memory_space<vmem>>, %arg3: memref<1x128xi32, #tpu.memory_space<vmem>>, %arg4: memref<1x1x1xf32, #tpu.memory_space<vmem>>, %arg5: memref<1x128xf32, #tpu.memory_space<vmem>>) attributes {dimension_semantics = [#tpu.dimension_semantics<parallel>, #tpu.dimension_semantics<arbitrary>], iteration_bounds = array<i64: 1, 1>, scalar_prefetch = 0 : i64, scratch_operands = 1 : i64, tpu.core_type = #tpu.core_type<tc>, window_params = [{transform_indices = @transform_0, window_bounds = array<i64: 10, 128>}, {transform_indices = @transform_1, window_bounds = array<i64: 1, 128>}, {transform_indices = @transform_2, window_bounds = array<i64: 1, 1, 1>}]} {
    %c0_i32 = arith.constant 0 : i32
    %0 = arith.cmpi eq, %arg1, %c0_i32 : i32
    %1 = arith.extui %0 : i1 to i32
    %c0_i32_0 = arith.constant 0 : i32
    %2 = arith.cmpi ne, %1, %c0_i32_0 : i32
    scf.if %2 {
      %cst_21 = arith.constant 0.000000e+00 : f32
      %54 = vector.broadcast %cst_21 : f32 to vector<1x128xf32>
      %c0_22 = arith.constant 0 : index
      %c0_23 = arith.constant 0 : index
      %55 = vector.load %arg5[%c0_22, %c0_23] : memref<1x128xf32, #tpu.memory_space<vmem>>, vector<1x128xf32>
      tpu.vector_store %arg5[%c0_22, %c0_23], %54 {strides = array<i32>} : memref<1x128xf32, #tpu.memory_space<vmem>>, vector<1x128xf32>,
    } else {
    }
    %c0 = arith.constant 0 : index
    %c0_1 = arith.constant 0 : index
    %3 = vector.load %arg2[%c0, %c0_1] : memref<10x128xf32, #tpu.memory_space<vmem>>, vector<10x128xf32>
    %c0_2 = arith.constant 0 : index
    %c0_3 = arith.constant 0 : index
    %4 = vector.load %arg3[%c0_2, %c0_3] : memref<1x128xi32, #tpu.memory_space<vmem>>, vector<1x128xi32>
    %5 = tpu.iota {dimensions = array<i32: 0>} : vector<10x128xi32>
    %6 = vector.broadcast %4 : vector<1x128xi32> to vector<10x128xi32>
    %7 = arith.cmpi eq, %5, %6 : vector<10x128xi32>
    %cst = arith.constant dense<0xFF800000> : vector<128xf32>
    %8 = vector.multi_reduction <maximumf>, %3, %cst [0] : vector<10x128xf32> to vector<128xf32>
    %9 = vector.shape_cast %8 : vector<128xf32> to vector<1x128xf32>
    %10 = vector.broadcast %9 : vector<1x128xf32> to vector<10x128xf32>
    %11 = arith.subf %3, %10 : vector<10x128xf32>
    %12 = math.exp %11 : vector<10x128xf32>
    %cst_4 = arith.constant dense<0.000000e+00> : vector<128xf32>
    %13 = vector.multi_reduction <add>, %12, %cst_4 [0] : vector<10x128xf32> to vector<128xf32>
    %14 = vector.shape_cast %13 : vector<128xf32> to vector<1x128xf32>
    %cst_5 = arith.constant 0.000000e+00 : f32
    %15 = vector.broadcast %cst_5 : f32 to vector<10x128xf32>
    %16 = arith.select %7, %3, %15 : vector<10x128xi1>, vector<10x128xf32>
    %cst_6 = arith.constant dense<0.000000e+00> : vector<128xf32>
    %17 = vector.multi_reduction <add>, %16, %cst_6 [0] : vector<10x128xf32> to vector<128xf32>
    %18 = vector.shape_cast %17 : vector<128xf32> to vector<1x128xf32>
    %19 = math.log %14 : vector<1x128xf32>
    %20 = arith.addf %19, %9 : vector<1x128xf32>
    %21 = arith.subf %20, %18 : vector<1x128xf32>
    %cst_7 = arith.constant 0.000000e+00 : f32
    %22 = vector.broadcast %cst_7 : f32 to vector<1x128xf32>
    %23 = arith.subf %22, %21 : vector<1x128xf32>
    %24 = math.exp %23 : vector<1x128xf32>
    %cst_8 = arith.constant 1.000000e-07 : f32
    %cst_9 = arith.constant 1.000000e+00 : f32
    %25 = vector.broadcast %cst_8 : f32 to vector<1x128xf32>
    %26 = arith.maximumf %25, %24 : vector<1x128xf32>
    %27 = vector.broadcast %cst_9 : f32 to vector<1x128xf32>
    %28 = arith.minimumf %27, %26 : vector<1x128xf32>
    %cst_10 = arith.constant 1.000000e+00 : f32
    %29 = vector.broadcast %cst_10 : f32 to vector<1x128xf32>
    %30 = arith.subf %29, %28 : vector<1x128xf32>
    %cst_11 = arith.constant 9.21034049 : f32
    %31 = vector.broadcast %cst_11 : f32 to vector<1x128xf32>
    %32 = arith.mulf %31, %30 : vector<1x128xf32>
    %c1_i32 = arith.constant 1 : i32
    %33 = arith.muli %arg0, %c1_i32 : i32
    %34 = arith.addi %33, %arg1 : i32
    %c128_i32 = arith.constant 128 : i32
    %35 = arith.muli %34, %c128_i32 : i32
    %36 = tpu.iota {dimensions = array<i32: 1>} : vector<1x128xi32>
    %37 = vector.broadcast %35 : i32 to vector<1x128xi32>
    %38 = arith.addi %37, %36 : vector<1x128xi32>
    %cst_12 = arith.constant 5.000000e-01 : f32
    %39 = vector.broadcast %cst_12 : f32 to vector<1x128xf32>
    %40 = arith.mulf %39, %21 : vector<1x128xf32>
    %cst_13 = arith.constant 5.000000e-01 : f32
    %41 = vector.broadcast %cst_13 : f32 to vector<1x128xf32>
    %42 = arith.mulf %41, %32 : vector<1x128xf32>
    %43 = arith.addf %40, %42 : vector<1x128xf32>
    %c0_14 = arith.constant 0 : index
    %c0_15 = arith.constant 0 : index
    %44 = vector.load %arg5[%c0_14, %c0_15] : memref<1x128xf32, #tpu.memory_space<vmem>>, vector<1x128xf32>
    %c8_i32 = arith.constant 8 : i32
    %45 = vector.broadcast %c8_i32 : i32 to vector<1x128xi32>
    %46 = arith.cmpi slt, %38, %45 : vector<1x128xi32>
    %cst_16 = arith.constant 0.000000e+00 : f32
    %47 = vector.broadcast %cst_16 : f32 to vector<1x128xf32>
    %48 = arith.select %46, %43, %47 : vector<1x128xi1>, vector<1x128xf32>
    %49 = arith.addf %44, %48 : vector<1x128xf32>
    %c0_17 = arith.constant 0 : index
    %c0_18 = arith.constant 0 : index
    %50 = vector.load %arg5[%c0_17, %c0_18] : memref<1x128xf32, #tpu.memory_space<vmem>>, vector<1x128xf32>
    tpu.vector_store %arg5[%c0_17, %c0_18], %49 {strides = array<i32>} : memref<1x128xf32, #tpu.memory_space<vmem>>, vector<1x128xf32>,
    %c0_i32_19 = arith.constant 0 : i32
    %51 = arith.cmpi eq, %arg1, %c0_i32_19 : i32
    %52 = arith.extui %51 : i1 to i32
    %c0_i32_20 = arith.constant 0 : i32
    %53 = arith.cmpi ne, %52, %c0_i32_20 : i32
    scf.if %53 {
      %c0_21 = arith.constant 0 : index
      %c0_22 = arith.constant 0 : index
      %54 = vector.load %arg5[%c0_21, %c0_22] : memref<1x128xf32, #tpu.memory_space<vmem>>, vector<1x128xf32>
      %cst_23 = arith.constant dense<0.000000e+00> : vector<1xf32>
      %55 = vector.multi_reduction <add>, %54, %cst_23 [1] : vector<1x128xf32> to vector<1xf32>
      %56 = vector.shape_cast %55 : vector<1xf32> to vector<1x1xf32>
      %cst_24 = arith.constant 1.250000e-01 : f32
      %57 = vector.broadcast %cst_24 : f32 to vector<1x1xf32>
      %58 = arith.mulf %56, %57 : vector<1x1xf32>
      %59 = vector.shape_cast %58 : vector<1x1xf32> to vector<1x1x1xf32>
      %c0_25 = arith.constant 0 : index
      %c0_26 = arith.constant 0 : index
      %c0_27 = arith.constant 0 : index
      %60 = vector.load %arg4[%c0_25, %c0_26, %c0_27] : memref<1x1x1xf32, #tpu.memory_space<vmem>>, vector<1x1x1xf32>
      tpu.vector_store %arg4[%c0_25, %c0_26, %c0_27], %59 {strides = array<i32>} : memref<1x1x1xf32, #tpu.memory_space<vmem>>, vector<1x1x1xf32>,
    } else {
    }
    return
  }
  func.func @transform_0(%arg0: i32, %arg1: i32) -> (i32, i32) {
    %c1_i32 = arith.constant 1 : i32
    %0 = arith.muli %arg0, %c1_i32 : i32
    %1 = arith.addi %0, %arg1 : i32
    %c0_i32 = arith.constant 0 : i32
    %c0_i32_0 = arith.constant 0 : i32
    return %c0_i32, %1 : i32, i32
  }
  func.func @transform_1(%arg0: i32, %arg1: i32) -> (i32, i32) {
    %c1_i32 = arith.constant 1 : i32
    %0 = arith.muli %arg0, %c1_i32 : i32
    %1 = arith.addi %0, %arg1 : i32
    %c0_i32 = arith.constant 0 : i32
    %c0_i32_0 = arith.constant 0 : i32
    return %c0_i32, %1 : i32, i32
  }
  func.func @transform_2(%arg0: i32, %arg1: i32) -> (i32, i32, i32) {
    %c0_i32 = arith.constant 0 : i32
    %c0_i32_0 = arith.constant 0 : i32
    %c0_i32_1 = arith.constant 0 : i32
    return %arg0, %c0_i32, %c0_i32_0 : i32, i32, i32
  }
}

</mosaic_0001>

<bundles_post_ra>
// kernel: tpu_custom_call.1
= control target key start
LH: loop header
LB: loop body
LE: loop exit
PB: predicated region body
PF: predicated region fallthrough
CT: control target
= control target key end

     0   :  { %7 = vsyncpa [#allocation4], 0  ;;  %s260_s0 = inlined_call_operand.hbm [shape: f32[10,128], index: 0, kind: input, shape index: {}]   ;;  %s261_s1 = inlined_call_operand.vmem [shape: s32[1,128], index: 1, kind: input, shape index: {}]   ;;  %s262_s2 = inlined_call_operand.hbm [shape: f32[1,1,1], index: 2, kind: output, shape index: {}]  }
   0x1   :  { %8 = vsyncpa [#allocation5], 0  ;;  %s210_s9 = smov [#allocation3]   ;;  %s162_s13 = scalar_lea.hbm %s260_s0, 256 }
   0x2   :  { %s17_s10 = sshll.u32 %s210_s9, 4  ;;  %p163_p0 = scmp.ne.s32.totalorder %s260_s0, %s162_s13  ;;  %s18_s10 = int_to_ptr.vmem [resolvable:$true] %s17_s10 }
   0x3   :  { %p166_p1 = scmp.lt.u32.totalorder %s162_s13, %s260_s0 }
   0x5   :  { %p168_p2 = pnand %p166_p1, %p163_p0 }
   0x7   :  { %171 = shalt.err (!%p168_p2)
}
   0x8   :  { %s172_s18 = scalar_lea.vmem %s18_s10, 256  ;;  %p177_p4 = scmp.lt.s32.totalorder %s18_s10, %s18_s10 }
   0x9   :  { %p173_p3 = scmp.ne.s32.totalorder %s18_s10, %s172_s18  ;;  %p178_p5 = scmp.lt.s32.totalorder %s172_s18, %s172_s18 }
   0xb   :  { %p179_p6 = por %p178_p5, %p177_p4 }
   0xd   :  { %p180_p7 = pnand %p179_p6, %p173_p3 }
   0xf   :  { %183 = shalt.err (!%p180_p7)
}
  0x10   :  { %s211_s19 = smov 128   ;;  %s212_s20 = smov 8  }
  0x11   :  { %23 = dma.hbm_to_vmem [thread:$0]  %s260_s0, 256, %s18_s10, [#allocation4], %s211_s19, %s211_s19, %s212_s20  }
  0x12   :  { %206 = dma.done.wait [#allocation4], 256  }
  0x13   :  { %207 = vsyncadd [#allocation4], 4294967040  ;;  %v213_v0 = vmov 0.0   ;;  %vm61_vm0 = vcmask 1041408   ;;  %v49_v1 = vld [vmem:[#allocation3] sm:$0xff]  ;;  %v52_v10 = vlaneseq  ;;  %vm123_vm4 = vcmask 1040384  }
  0x14   :  { %48 = vst [vmem:[#allocation2] sm:$0x1] %v213_v0  ;;  %v50_v2 = vld [vmem:[#allocation3 + $0x8] sm:$0x3]  ;;  %v148_v18 = vld [vmem:[%s261_s1] ss:$0 sm:$0xff] }
  0x15   :  { %v62_v3 = vsel %vm61_vm0, %v50_v2, -inf  ;;  %v53_v14 = vshrl.u32 %v52_v10, 7  ;;  %v108_v49 = vand.u32 127, %v52_v10  ;;  %s214_s1 = smov [#allocation6]   ;;  %vm128_vm5 = vcmask 0  }
  0x16   :  { %v63_v4 = vmax.f32 %v49_v1, %v62_v3  ;;  %s136_s24 = sshll.u32 %s214_s1, 4  ;;  %s137_s24 = int_to_ptr.vmem [resolvable:$true] %s136_s24 }
  0x17   :  { %v54_v17 = vadd.s32 8, %v53_v14  ;;  %vm59_vm2 = vcmp.eq.s32.totalorder %v53_v14, %v148_v18  ;;  %vm115_vm3 = vcmp.lt.s32.totalorder %v108_v49, 8  ;;  %s184_s25 = scalar_lea.vmem %s137_s24, 16  ;;  %s188_s26 = scalar_lea.vmem %s137_s24, 32 }
  0x18   :  { %v64_v5 = vrot.slane %v63_v4, 4  ;;  %v84_v22 = vsel %vm59_vm2, %v49_v1, 0.0  ;;  %p185_p8 = scmp.ne.s32.totalorder %s137_s24, %s184_s25  ;;  %p189_p9 = scmp.lt.s32.totalorder %s137_s24, %s137_s24 }
  0x19   :  { %vm60_vm1 = vcmp.eq.s32.totalorder %v54_v17, %v148_v18  ;;  %p190_p10 = scmp.lt.s32.totalorder %s188_s26, %s184_s25 }
  0x1a   :  { %v65_v6 = vmax.f32 %v63_v4, %v64_v5  ;;  %v85_v19 = vsel %vm60_vm1, %v50_v2, 0.0 }
  0x1b   :  { %v86_v23 = vsel %vm61_vm0, %v85_v19, 0.0  ;;  %v114_v54 = vld [vmem:[#allocation2] sm:$0x1]  ;;  %p191_p11 = por %p190_p10, %p189_p9 }
  0x1c   :  { %v66_v7 = vrot.slane %v65_v6, 2  ;;  %v87_v26 = vadd.f32 %v86_v23, %v84_v22 }
  0x1d   :  { %p192_p12 = pnand %p191_p11, %p185_p8 }
  0x1e   :  { %v67_v8 = vmax.f32 %v65_v6, %v66_v7  ;;  %v88_v29 = vrot.slane %v87_v26, 4 }
  0x20   :  { %v68_v9 = vrot.slane %v67_v8, 1  ;;  %v89_v32 = vadd.f32 %v88_v29, %v87_v26 }
  0x22   :  { %v69_v11 = vmax.f32 %v67_v8, %v68_v9  ;;  %v90_v35 = vrot.slane %v89_v32, 2 }
  0x24   :  { %v70_v12 = vsub.f32 %v49_v1, %v69_v11  ;;  %v71_v13 = vsub.f32 %v50_v2, %v69_v11  ;;  %v91_v36 = vadd.f32 %v90_v35, %v89_v32 }
  0x26   :  { %v72_v15 = vmul.f32 1.442695, %v70_v12  ;;  %v74_v16 = vmul.f32 1.442695, %v71_v13  ;;  %v92_v37 = vrot.slane %v91_v36, 1 }
  0x28   :  { %154 = vpow2.f32 %v72_v15  ;;  %v93_v39 = vadd.f32 %v92_v37, %v91_v36 }
  0x29   :  { %156 = vpow2.f32 %v74_v16 }
  0x32   :  { %v155_v20 = vpop.eup %154 }
  0x33   :  { %v157_v21 = vpop.eup %156 }
  0x34   :  { %v76_v24 = vsel %vm61_vm0, %v157_v21, 0.0 }
  0x35   :  { %v77_v25 = vadd.f32 %v155_v20, %v76_v24 }
  0x37   :  { %v78_v27 = vrot.slane %v77_v25, 4 }
  0x39   :  { %v79_v28 = vadd.f32 %v78_v27, %v77_v25 }
  0x3b   :  { %v80_v30 = vrot.slane %v79_v28, 2 }
  0x3d   :  { %v81_v31 = vadd.f32 %v80_v30, %v79_v28 }
  0x3f   :  { %v82_v33 = vrot.slane %v81_v31, 1 }
  0x41   :  { %v83_v34 = vadd.f32 %v82_v33, %v81_v31 }
  0x43   :  { %158 = vlog2.f32 %v83_v34 }
  0x4d   :  { %v159_v38 = vpop.eup %158 }
  0x4e   :  { %v95_v40 = vmul.f32 0.6931472, %v159_v38 }
  0x50   :  { %v96_v41 = vadd.f32 %v95_v40, %v69_v11 }
  0x52   :  { %v97_v42 = vsub.f32 %v96_v41, %v93_v39 }
  0x54   :  { %v98_v43 = vsub.f32 0.0, %v97_v42  ;;  %v111_v51 = vmul.f32 0.5, %v97_v42 }
  0x56   :  { %v99_v44 = vmul.f32 1.442695, %v98_v43 }
  0x58   :  { %160 = vpow2.f32 %v99_v44 }
  0x62   :  { %v161_v45 = vpop.eup %160 }
  0x63   :  { %v101_v46 = vmax.f32 %v161_v45, 1e-07 }
  0x65   :  { %v102_v47 = vmin.f32 %v101_v46, 1.0 }
  0x67   :  { %v103_v48 = vsub.f32 1.0, %v102_v47 }
  0x69   :  { %v104_v50 = vmul.f32 9.2103405, %v103_v48 }
  0x6b   :  { %v112_v52 = vmul.f32 0.5, %v104_v50 }
  0x6d   :  { %v113_v53 = vadd.f32 %v112_v52, %v111_v51 }
  0x6f   :  { %v116_v55 = vsel %vm115_vm3, %v113_v53, 0.0 }
  0x70   :  { %v117_v56 = vadd.f32 %v116_v55, %v114_v54 }
  0x72   :  { %118 = vst [vmem:[#allocation2] sm:$0x1] %v117_v56 }
  0x79   :  { %v122_v57 = vld [vmem:[#allocation2] sm:$0x1] }
  0x7a   :  { %v124_v58 = vsel %vm123_vm4, %v122_v57, 0.0 }
  0x7b   :  { %125 = vadd.xlane.f32.xlu0 %v124_v58 }
 0x108   :  { %v126_v59 = vpop.xlane.xlu0 %125 }
 0x109   :  { %v127_v60 = vmul.f32 0.125, %v126_v59 }
 0x10b   :  { %129 = vst.msk [vmem:[#allocation6] sm:$0x1] %vm128_vm5, %v127_v60 }
 0x10c   :  { %195 = shalt.err (!%p192_p12)
}
 0x10d   :  { %s196_s29 = scalar_lea.hbm %s262_s2, 16 }
 0x10e   :  { %p197_p13 = scmp.ne.s32.totalorder %s262_s2, %s196_s29  ;;  %p200_p0 = scmp.lt.u32.totalorder %s196_s29, %s262_s2 }
 0x110   :  { %p202_p1 = pnand %p200_p0, %p197_p13 }
 0x112   :  { %205 = shalt.err (!%p202_p1)
}
 0x113   :  { %139 = dma.vmem_to_hbm [thread:$0]  %s137_s24, 16, %s262_s2, [#allocation5]  }
 0x114   :  { %208 = dma.done.wait [#allocation5], 16  }
 0x115   :  { %209 = vsyncadd [#allocation5], 4294967280 }
 0x116   :  { %143 = vsyncpa [#allocation4], 1 }
 0x117   :  { %144 = vsyncpa [#allocation5], 1 }

</bundles_post_ra>
